<compile_context>
chip_gen: v7x
topology: tpu7x:2x2x1
jax: 0.10.0
libtpu: 0.0.40
codegen_flags: <defaults>
</compile_context>

<pallas_src>
import functools

import jax
import jax.numpy as jnp
from jax.experimental import pallas as pl
from jax.experimental.pallas import tpu as pltpu


_MAX_SINGLE_BLOCK_T = 65536   # above this, use the T-tiled (two-kernel) path
_DEFAULT_BLOCK_T = 2048       # lane tile for the T-tiled path (multiple of 128)


# ----------------------------------------------------------------------------- utils
def _round_up(v, m):
    return -(-v // m) * m


def _sublane(itemsize):
    return 8 if itemsize >= 4 else (16 if itemsize == 2 else 32)


def _recip(x, approx):
    # Per-row reciprocal; approx=True pushes it to the otherwise-idle EUP slot.
    return pl.reciprocal(x, approx=True) if approx else 1.0 / x


def _vmem_capacity_bytes():
    try:
        cap = int(pltpu.get_tpu_info().vmem_capacity_bytes)
        if cap > 0:
            return cap
    except Exception:
        pass
    return 128 << 20   # v5e / v6e physical VMEM per TensorCore


def _pick_target_tile_bytes(itemsize, vmem_cap):
    """Target HBM bytes per x tile, derived from the real per-step working set."""
    # Working set per grid step for an input tile of X bytes:
    #   2x double-buffered input + 2x double-buffered output tiles  -> 4 * X
    #   ~4 full-tile f32 temporaries inside the kernel body         -> 4 * X * (4/itemsize)
    factor = 4 + 16 // itemsize
    usable = max(8 << 20, vmem_cap * 7 // 10 - (2 << 20))
    # Larger tiles on v7x (64 MiB VMEM / 3.2 TB/s HBM: fixed per-step overhead is a
    # bigger relative cost); ~4 MiB already sits near the HBM roofline on v5e/v6e.
    upper = (6 << 20) if vmem_cap <= (64 << 20) else (4 << 20)
    return int(max(1 << 20, min(upper, usable // factor)))


def _pick_tile_b(B, row_width, itemsize, target_bytes, min_steps=4):
    """Rows per grid step: sublane-aligned, sized for `target_bytes`, and capped so
    the grid has enough steps for pipelining and an even 2-TensorCore split (v7x)."""
    sub = _sublane(itemsize)
    row_bytes = max(row_width * itemsize, 1)
    tile_b = max(sub, (target_bytes // row_bytes) // sub * sub)
    if B >= 2 * sub:
        # Never collapse to grid=(1,) when B allows: >= min_steps steps when possible,
        # always >= 2 so both v7x TensorCores get work.
        steps = max(2, min(min_steps, B // sub))
        cap = max(sub, _round_up(pl.cdiv(B, steps), sub))
        tile_b = min(tile_b, cap)
    if tile_b >= B:
        return int(B)
    return int(tile_b)


def _compiler_params(working_bytes, vmem_cap, semantics):
    # Leave ~25% of physical VMEM for Mosaic internal scratch / semaphores:
    # ~48 MiB cap on v7x, ~96 MiB on v5e/v6e.
    limit = int(min(max(working_bytes, 16 << 20), vmem_cap * 3 // 4))
    return pltpu.CompilerParams(
        dimension_semantics=semantics,
        vmem_limit_bytes=limit,
    )


# --------------------------------------------------------------------------- kernels
def _instance_norm_kernel(x_ref, out_ref, stats_ref, *, eps, approx):
    """Fused stats + normalize for one (tile_b, T) row block (full T on lanes)."""
    xf = x_ref[...].astype(jnp.float32)

    valid = jnp.logical_not(jnp.isnan(xf))
    cnt = jnp.sum(valid.astype(jnp.float32), axis=-1, keepdims=True)
    has_valid = cnt > 0.0
    inv_cnt = _recip(jnp.where(has_valid, cnt, 1.0), approx)

    x_zeroed = jnp.where(valid, xf, 0.0)
    # nanmean -> NaN when all entries are NaN; nan_to_num(nan=0.0) -> 0.0
    loc = jnp.where(has_valid,
                    jnp.sum(x_zeroed, axis=-1, keepdims=True) * inv_cnt,
                    0.0)

    # NOTE: (xf - loc) is recomputed for the output store below instead of being
    # kept live across this reduction (one fewer full-tile f32 temporary).
    sq = jnp.where(valid, (xf - loc) * (xf - loc), 0.0)
    var = jnp.sum(sq, axis=-1, keepdims=True) * inv_cnt
    # nanmean(...).sqrt() -> NaN when all entries are NaN; nan_to_num(nan=1.0) -> 1.0
    scale = jnp.where(has_valid, jnp.sqrt(var), 1.0)
    # scale == 0 -> |loc| + eps
    scale = jnp.where(scale == 0.0, jnp.abs(loc) + eps, scale)

    inv_scale = _recip(scale, approx)
    out_ref[...] = ((xf - loc) * inv_scale).astype(out_ref.dtype)
    # loc and scale packed into a single (tile_b, 2) output block.
    stats_ref[...] = jnp.concatenate([loc, scale], axis=-1).astype(stats_ref.dtype)


def _stats_tiled_kernel(x_ref, stats_ref, cnt_ref, s1_ref, s2_ref,
                        *, eps, t_total, block_t, approx):
    """T-tiled statistics (very long T): accumulate cnt / sum / sum-of-squares per
    row across the "arbitrary" T grid axis, finalize loc/scale at the last step.

    Uses the one-pass var = E[x^2] - loc^2 formula -> tiny cancellation error on
    (near-)constant rows compared with the reference two-pass formula.
    """
    t = pl.program_id(1)

    @pl.when(t == 0)
    def _():
        cnt_ref[...] = jnp.zeros_like(cnt_ref)
        s1_ref[...] = jnp.zeros_like(s1_ref)
        s2_ref[...] = jnp.zeros_like(s2_ref)

    xf = x_ref[...].astype(jnp.float32)
    # Mask out-of-range (padded) lanes of the last partial T block.
    col = jax.lax.broadcasted_iota(jnp.int32, xf.shape, 1) + t * block_t
    valid = jnp.logical_and(jnp.logical_not(jnp.isnan(xf)), col < t_total)
    xz = jnp.where(valid, xf, 0.0)

    cnt_ref[...] += jnp.sum(valid.astype(jnp.float32), axis=-1, keepdims=True)
    s1_ref[...] += jnp.sum(xz, axis=-1, keepdims=True)
    s2_ref[...] += jnp.sum(xz * xz, axis=-1, keepdims=True)

    @pl.when(t == pl.num_programs(1) - 1)
    def _():
        cnt = cnt_ref[...]
        has_valid = cnt > 0.0
        inv_cnt = _recip(jnp.where(has_valid, cnt, 1.0), approx)
        loc = jnp.where(has_valid, s1_ref[...] * inv_cnt, 0.0)
        var = jnp.maximum(s2_ref[...] * inv_cnt - loc * loc, 0.0)
        scale = jnp.where(has_valid, jnp.sqrt(var), 1.0)
        scale = jnp.where(scale == 0.0, jnp.abs(loc) + eps, scale)
        stats_ref[...] = jnp.concatenate([loc, scale], axis=-1).astype(stats_ref.dtype)


def _apply_kernel(stats_ref, x_ref, out_ref, *, tile_b, approx):
    """out = (x - loc) / scale with a grid-resident (padded_B, 2) stats input."""
    i = pl.program_id(0)
    r0 = pl.multiple_of(i * tile_b, tile_b)
    stats = stats_ref[pl.ds(r0, tile_b), :].astype(jnp.float32)   # (tile_b, 2)
    loc = stats[:, 0:1]
    inv_scale = _recip(stats[:, 1:2], approx)
    xf = x_ref[...].astype(jnp.float32)
    out_ref[...] = ((xf - loc) * inv_scale).astype(out_ref.dtype)


# --------------------------------------------------------------------------- drivers
def _forward_fused(x, eps, tile_b, vmem_cap, approx):
    B, T = x.shape
    itemsize = jnp.dtype(x.dtype).itemsize
    nb = pl.cdiv(B, tile_b)
    tile_in = tile_b * T * itemsize
    tile_f32 = tile_b * T * 4
    working = 4 * tile_in + 4 * tile_f32 + (2 << 20)
    params = _compiler_params(working, vmem_cap, ("parallel",))

    x_spec = pl.BlockSpec((tile_b, T), lambda i: (i, 0))
    stats_spec = pl.BlockSpec((tile_b, 2), lambda i: (i, 0))

    out, stats = pl.pallas_call(
        functools.partial(_instance_norm_kernel, eps=eps, approx=approx),
        out_shape=(jax.ShapeDtypeStruct((B, T), x.dtype),
                   jax.ShapeDtypeStruct((B, 2), x.dtype)),
        grid=(nb,),
        in_specs=[x_spec],
        out_specs=(x_spec, stats_spec),
        compiler_params=params,
    )(x)
    return out, stats


def _stats_tiled(x, eps, tile_b, block_t, vmem_cap, approx):
    B, T = x.shape
    itemsize = jnp.dtype(x.dtype).itemsize
    nb = pl.cdiv(B, tile_b)
    nt = pl.cdiv(T, block_t)
    tile_in = tile_b * block_t * itemsize
    working = 2 * tile_in + 3 * tile_b * block_t * 4 + (2 << 20)
    params = _compiler_params(working, vmem_cap, ("parallel", "arbitrary"))

    return pl.pallas_call(
        functools.partial(_stats_tiled_kernel, eps=eps, t_total=T,
                          block_t=block_t, approx=approx),
        out_shape=jax.ShapeDtypeStruct((B, 2), x.dtype),
        grid=(nb, nt),
        in_specs=[pl.BlockSpec((tile_b, block_t), lambda i, j: (i, j))],
        out_specs=pl.BlockSpec((tile_b, 2), lambda i, j: (i, 0)),
        scratch_shapes=[pltpu.VMEM((tile_b, 1), jnp.float32),
                        pltpu.VMEM((tile_b, 1), jnp.float32),
                        pltpu.VMEM((tile_b, 1), jnp.float32)],
        compiler_params=params,
    )(x)


def _apply(x, stats, tile_b, block_t, vmem_cap, approx):
    B, T = x.shape
    itemsize = jnp.dtype(x.dtype).itemsize
    nb = pl.cdiv(B, tile_b)
    nt = pl.cdiv(T, block_t)
    padded_B = nb * tile_b
    if padded_B != B:
        # Pad the tiny stats tensor (not x!) so the in-kernel dynamic row slice of
        # the resident stats block never reads out of bounds on the last partial tile.
        stats = jnp.pad(stats, ((0, padded_B - B), (0, 0)), constant_values=1.0)

    tile_in = tile_b * block_t * itemsize
    working = 4 * tile_in + 2 * tile_b * block_t * 4 + 2 * padded_B * 2 * 4 + (2 << 20)
    params = _compiler_params(working, vmem_cap, ("parallel", "parallel"))

    return pl.pallas_call(
        functools.partial(_apply_kernel, tile_b=tile_b, approx=approx),
        out_shape=jax.ShapeDtypeStruct((B, T), x.dtype),
        grid=(nb, nt),
        in_specs=[
            # Whole-batch stats: constant block index -> DMA'd once, VMEM-resident.
            pl.BlockSpec((padded_B, 2), lambda i, j: (0, 0)),
            pl.BlockSpec((tile_b, block_t), lambda i, j: (i, j)),
        ],
        out_specs=pl.BlockSpec((tile_b, block_t), lambda i, j: (i, j)),
        compiler_params=params,
    )(stats, x)


def instance_norm(x, loc_scale=None, eps=1e-5, tile_b=None, block_t=None,
                  approx_reciprocal=False):
    """Pallas equivalent of InstanceNorm.forward. Returns (out, (loc, scale))."""
    B, T = x.shape
    itemsize = jnp.dtype(x.dtype).itemsize
    vmem_cap = _vmem_capacity_bytes()

    # Effective lane width of one grid step (full T, unless the T-tiled path is used).
    tile_t = T
    if block_t is not None or T > _MAX_SINGLE_BLOCK_T:
        tile_t = min(T, _round_up(block_t if block_t is not None else _DEFAULT_BLOCK_T, 128))
    use_tiled_t = tile_t < T

    if tile_b is None:
        target = _pick_target_tile_bytes(itemsize, vmem_cap)
        tile_b = _pick_tile_b(B, tile_t, itemsize, target)

    if loc_scale is None:
        if not use_tiled_t:
            out, stats = _forward_fused(x, eps, tile_b, vmem_cap, approx_reciprocal)
        else:
            stats = _stats_tiled(x, eps, tile_b, tile_t, vmem_cap, approx_reciprocal)
            out = _apply(x, stats, tile_b, tile_t, vmem_cap, approx_reciprocal)
        loc = stats[:, 0:1]
        scale = stats[:, 1:2]
        return out, (loc, scale)
    else:
        loc, scale = loc_scale
        stats = jnp.concatenate(
            [jnp.asarray(loc).reshape(B, 1), jnp.asarray(scale).reshape(B, 1)], axis=-1)
        out = _apply(x, stats, tile_b, tile_t, vmem_cap, approx_reciprocal)
        return out, (loc, scale)


def _reference(x, eps=1e-5):
    # Pure-JAX reference mirroring the PyTorch module.
    loc = jnp.nan_to_num(jnp.nanmean(x, axis=-1, keepdims=True), nan=0.0)
    scale = jnp.nan_to_num(
        jnp.sqrt(jnp.nanmean((x - loc) ** 2, axis=-1, keepdims=True)), nan=1.0
    )
    scale = jnp.where(scale == 0.0, jnp.abs(loc) + eps, scale)
    return (x - loc) / scale, (loc, scale)


if __name__ == "__main__":
    key = jax.random.PRNGKey(0)

    # --- test 1: small shape, NaN / constant-row edge cases (single grid step) ---
    B, T = 4, 64
    x = jax.random.normal(key, (B, T), dtype=jnp.float32) * 3.0 + 1.5
    x = x.at[0, 3].set(jnp.nan)
    x = x.at[1, 10:20].set(jnp.nan)
    x = x.at[2, :].set(jnp.nan)          # all-NaN row -> loc=0, scale=1
    x = x.at[3, :].set(2.75)             # constant row -> scale==0 path -> |loc| + eps

    out, (loc, scale) = instance_norm(x)
    jax.block_until_ready(out)
    out_ref, (loc_ref, scale_ref) = _reference(x)
    assert jnp.allclose(out, out_ref, atol=1e-5, rtol=1e-5, equal_nan=True)
    assert jnp.allclose(loc, loc_ref, atol=1e-6, rtol=1e-6)
    assert jnp.allclose(scale, scale_ref, atol=1e-5, rtol=1e-5)

    # provided-(loc, scale) path (resident stats input)
    out2, _ = instance_norm(x, loc_scale=(loc, scale))
    jax.block_until_ready(out2)
    assert jnp.allclose(out2, out_ref, atol=1e-5, rtol=1e-5, equal_nan=True)

    # --- test 2: multi-step grid with a partial last batch tile (B % tile_b != 0) ---
    B2, T2 = 30, 256
    x2 = jax.random.normal(jax.random.PRNGKey(0), (B2, T2), dtype=jnp.float32) * 2.0 - 0.5
    x2 = x2.at[5, :7].set(jnp.nan)

    out3, (loc3, scale3) = instance_norm(x2)     # auto tile_b -> >=2 grid steps
    jax.block_until_ready(out3)
    out3_ref, (loc3_ref, scale3_ref) = _reference(x2)
    assert jnp.allclose(out3, out3_ref, atol=1e-5, rtol=1e-5, equal_nan=True)
    assert jnp.allclose(loc3, loc3_ref, atol=1e-5, rtol=1e-5)
    assert jnp.allclose(scale3, scale3_ref, atol=1e-5, rtol=1e-5)

    out4, _ = instance_norm(x2, loc_scale=(loc3, scale3))
    jax.block_until_ready(out4)
    assert jnp.allclose(out4, out3_ref, atol=1e-5, rtol=1e-5, equal_nan=True)

    # --- test 3: force the long-T fallback (grid (nb, nt), partial last T block) ---
    B3, T3 = 16, 320
    x3 = jax.random.normal(jax.random.PRNGKey(0), (B3, T3), dtype=jnp.float32) * 2.0 + 0.5
    x3 = x3.at[1, 17:40].set(jnp.nan)
    x3 = x3.at[7, :].set(jnp.nan)        # all-NaN row -> loc=0, scale=1

    out5, (loc5, scale5) = instance_norm(x3, tile_b=8, block_t=128)
    jax.block_until_ready(out5)
    out5_ref, (loc5_ref, scale5_ref) = _reference(x3)
    # the fallback's one-pass E[x^2]-loc^2 variance -> slightly looser tolerance
    assert jnp.allclose(out5, out5_ref, atol=1e-4, rtol=1e-4, equal_nan=True)
    assert jnp.allclose(loc5, loc5_ref, atol=1e-5, rtol=1e-5)
    assert jnp.allclose(scale5, scale5_ref, atol=1e-4, rtol=1e-4)

    print("KERNEL_OK")
</pallas_src>

<mosaic_0001>
module attributes {stable_mosaic.version = 11 : i64} {
  func.func @_instance_norm_kernel(%arg0: i32, %arg1: memref<4x64xf32, #tpu.memory_space<vmem>>, %arg2: memref<4x64xf32, #tpu.memory_space<vmem>>, %arg3: memref<4x2xf32, #tpu.memory_space<vmem>>) attributes {dimension_semantics = [#tpu.dimension_semantics<parallel>], iteration_bounds = array<i64: 1>, scalar_prefetch = 0 : i64, scratch_operands = 0 : i64, tpu.core_type = #tpu.core_type<tc>, window_params = [{transform_indices = @transform_0, window_bounds = array<i64: 4, 64>}, {transform_indices = @transform_1, window_bounds = array<i64: 4, 64>}, {transform_indices = @transform_2, window_bounds = array<i64: 4, 2>}]} {
    %c0 = arith.constant 0 : index
    %c0_0 = arith.constant 0 : index
    %0 = vector.load %arg1[%c0, %c0_0] : memref<4x64xf32, #tpu.memory_space<vmem>>, vector<4x64xf32>
    %1 = arith.cmpf one, %0, %0 : vector<4x64xf32>
    %cst = arith.constant dense<true> : vector<4x64xi1>
    %2 = arith.xori %1, %cst : vector<4x64xi1>
    %3 = arith.extui %2 : vector<4x64xi1> to vector<4x64xi32>
    %4 = arith.sitofp %3 : vector<4x64xi32> to vector<4x64xf32>
    %cst_1 = arith.constant dense<0.000000e+00> : vector<4xf32>
    %5 = vector.multi_reduction <add>, %4, %cst_1 [1] : vector<4x64xf32> to vector<4xf32>
    %6 = vector.shape_cast %5 : vector<4xf32> to vector<4x1xf32>
    %cst_2 = arith.constant 0.000000e+00 : f32
    %7 = vector.broadcast %cst_2 : f32 to vector<4x1xf32>
    %8 = arith.cmpf ogt, %6, %7 : vector<4x1xf32>
    %cst_3 = arith.constant 1.000000e+00 : f32
    %9 = vector.broadcast %cst_3 : f32 to vector<4x1xf32>
    %10 = arith.select %8, %6, %9 : vector<4x1xi1>, vector<4x1xf32>
    %cst_4 = arith.constant 1.000000e+00 : f32
    %11 = vector.broadcast %cst_4 : f32 to vector<4x1xf32>
    %12 = arith.divf %11, %10 : vector<4x1xf32>
    %cst_5 = arith.constant 0.000000e+00 : f32
    %13 = vector.broadcast %cst_5 : f32 to vector<4x64xf32>
    %14 = arith.select %2, %0, %13 : vector<4x64xi1>, vector<4x64xf32>
    %cst_6 = arith.constant dense<0.000000e+00> : vector<4xf32>
    %15 = vector.multi_reduction <add>, %14, %cst_6 [1] : vector<4x64xf32> to vector<4xf32>
    %16 = vector.shape_cast %15 : vector<4xf32> to vector<4x1xf32>
    %17 = arith.mulf %16, %12 : vector<4x1xf32>
    %cst_7 = arith.constant 0.000000e+00 : f32
    %18 = vector.broadcast %cst_7 : f32 to vector<4x1xf32>
    %19 = arith.select %8, %17, %18 : vector<4x1xi1>, vector<4x1xf32>
    %20 = vector.broadcast %19 : vector<4x1xf32> to vector<4x64xf32>
    %21 = arith.subf %0, %20 : vector<4x64xf32>
    %22 = vector.broadcast %19 : vector<4x1xf32> to vector<4x64xf32>
    %23 = arith.subf %0, %22 : vector<4x64xf32>
    %24 = arith.mulf %21, %23 : vector<4x64xf32>
    %cst_8 = arith.constant 0.000000e+00 : f32
    %25 = vector.broadcast %cst_8 : f32 to vector<4x64xf32>
    %26 = arith.select %2, %24, %25 : vector<4x64xi1>, vector<4x64xf32>
    %cst_9 = arith.constant dense<0.000000e+00> : vector<4xf32>
    %27 = vector.multi_reduction <add>, %26, %cst_9 [1] : vector<4x64xf32> to vector<4xf32>
    %28 = vector.shape_cast %27 : vector<4xf32> to vector<4x1xf32>
    %29 = arith.mulf %28, %12 : vector<4x1xf32>
    %30 = math.sqrt %29 : vector<4x1xf32>
    %cst_10 = arith.constant 1.000000e+00 : f32
    %31 = vector.broadcast %cst_10 : f32 to vector<4x1xf32>
    %32 = arith.select %8, %30, %31 : vector<4x1xi1>, vector<4x1xf32>
    %cst_11 = arith.constant 0.000000e+00 : f32
    %33 = vector.broadcast %cst_11 : f32 to vector<4x1xf32>
    %34 = arith.cmpf oeq, %32, %33 : vector<4x1xf32>
    %35 = math.absf %19 : vector<4x1xf32>
    %cst_12 = arith.constant 9.99999974E-6 : f32
    %36 = vector.broadcast %cst_12 : f32 to vector<4x1xf32>
    %37 = arith.addf %35, %36 : vector<4x1xf32>
    %38 = arith.select %34, %37, %32 : vector<4x1xi1>, vector<4x1xf32>
    %cst_13 = arith.constant 1.000000e+00 : f32
    %39 = vector.broadcast %cst_13 : f32 to vector<4x1xf32>
    %40 = arith.divf %39, %38 : vector<4x1xf32>
    %41 = vector.broadcast %19 : vector<4x1xf32> to vector<4x64xf32>
    %42 = arith.subf %0, %41 : vector<4x64xf32>
    %43 = vector.broadcast %40 : vector<4x1xf32> to vector<4x64xf32>
    %44 = arith.mulf %42, %43 : vector<4x64xf32>
    %c0_14 = arith.constant 0 : index
    %c0_15 = arith.constant 0 : index
    %45 = vector.load %arg2[%c0_14, %c0_15] : memref<4x64xf32, #tpu.memory_space<vmem>>, vector<4x64xf32>
    tpu.vector_store %arg2[%c0_14, %c0_15], %44 {strides = array<i32>} : memref<4x64xf32, #tpu.memory_space<vmem>>, vector<4x64xf32>,
    %46 = tpu.concatenate %19, %38 in 1 : vector<4x1xf32>, vector<4x1xf32> -> vector<4x2xf32>
    %c0_16 = arith.constant 0 : index
    %c0_17 = arith.constant 0 : index
    %47 = vector.load %arg3[%c0_16, %c0_17] : memref<4x2xf32, #tpu.memory_space<vmem>>, vector<4x2xf32>
    tpu.vector_store %arg3[%c0_16, %c0_17], %46 {strides = array<i32>} : memref<4x2xf32, #tpu.memory_space<vmem>>, vector<4x2xf32>,
    return
  }
  func.func @transform_0(%arg0: i32) -> (i32, i32) {
    %c0_i32 = arith.constant 0 : i32
    %c0_i32_0 = arith.constant 0 : i32
    return %arg0, %c0_i32 : i32, i32
  }
  func.func @transform_1(%arg0: i32) -> (i32, i32) {
    %c0_i32 = arith.constant 0 : i32
    %c0_i32_0 = arith.constant 0 : i32
    return %arg0, %c0_i32 : i32, i32
  }
  func.func @transform_2(%arg0: i32) -> (i32, i32) {
    %c0_i32 = arith.constant 0 : i32
    %c0_i32_0 = arith.constant 0 : i32
    return %arg0, %c0_i32 : i32, i32
  }
}

</mosaic_0001>

<bundles_post_ra>
// kernel: tpu_custom_call.1
= control target key start
LH: loop header
LB: loop body
LE: loop exit
PB: predicated region body
PF: predicated region fallthrough
CT: control target
= control target key end

     0   :  { %8 = vsyncpa [#allocation3], 0  ;;  %s210_s0 = inlined_call_operand.hbm [shape: f32[4,64], index: 0, kind: input, shape index: {}]   ;;  %s211_s1 = inlined_call_operand.hbm [shape: f32[4,64], index: 1, kind: output, shape index: {0}]   ;;  %s212_s2 = inlined_call_operand.vmem [shape: f32[4,2], index: 2, kind: output, shape index: {1}]  }
   0x1   :  { %9 = vsyncpa [#allocation4], 0  ;;  %s147_s9 = smov [#allocation2]   ;;  %s99_s13 = scalar_lea.hbm %s210_s0, 64 }
   0x2   :  { %s16_s10 = sshll.u32 %s147_s9, 4  ;;  %p100_p0 = scmp.ne.s32.totalorder %s210_s0, %s99_s13  ;;  %s17_s10 = int_to_ptr.vmem [resolvable:$true] %s16_s10 }
   0x3   :  { %p103_p1 = scmp.lt.u32.totalorder %s99_s13, %s210_s0 }
   0x5   :  { %p105_p2 = pnand %p103_p1, %p100_p0 }
   0x7   :  { %108 = shalt.err (!%p105_p2)
}
   0x8   :  { %s109_s18 = scalar_lea.vmem %s17_s10, 64  ;;  %p114_p4 = scmp.lt.s32.totalorder %s17_s10, %s17_s10 }
   0x9   :  { %p110_p3 = scmp.ne.s32.totalorder %s17_s10, %s109_s18  ;;  %p115_p5 = scmp.lt.s32.totalorder %s109_s18, %s109_s18 }
   0xb   :  { %p116_p6 = por %p115_p5, %p114_p4 }
   0xd   :  { %p117_p7 = pnand %p116_p6, %p110_p3 }
   0xf   :  { %120 = shalt.err (!%p117_p7)
}
  0x10   :  { %19 = dma.hbm_to_vmem [thread:$0]  %s210_s0, 64, %s17_s10, [#allocation3]  }
  0x11   :  { %143 = dma.done.wait [#allocation3], 64  }
  0x12   :  { %144 = vsyncadd [#allocation3], 4294967232  ;;  %v23_v0 = vld [vmem:[#allocation2] sm:$0xf]  ;;  %vm28_vm1 = vcmask 519168   ;;  %vm148_vm2 = vmmov 1  }
  0x13   :  { %vm24_vm0 = vcmp.ne.f32.partialorder %v23_v0, %v23_v0  ;;  %v149_v2 = vmov 0.0   ;;  %vm65_vm7 = vcmask 7168   ;;  %vm67_vm9 = vcmask 11264   ;;  %s150_s22 = smov [#allocation5]  }
  0x14   :  { %vm178_vm3 = vmxor %vm24_vm0, %vm148_vm2  ;;  %s75_s23 = sshll.u32 %s150_s22, 4  ;;  %s76_s23 = int_to_ptr.vmem [resolvable:$true] %s75_s23 }
  0x15   :  { %v88_v3 = vsel %vm178_vm3, 1.0, %v149_v2  ;;  %v36_v4 = vsel %vm178_vm3, %v23_v0, 0.0  ;;  %s121_s24 = scalar_lea.vmem %s76_s23, 64  ;;  %p126_p9 = scmp.lt.s32.totalorder %s76_s23, %s76_s23 }
  0x16   :  { %v29_v5 = vsel %vm28_vm1, %v88_v3, 0.0  ;;  %v37_v6 = vsel %vm28_vm1, %v36_v4, 0.0  ;;  %p122_p8 = scmp.ne.s32.totalorder %s76_s23, %s121_s24  ;;  %p127_p10 = scmp.lt.s32.totalorder %s121_s24, %s121_s24 }
  0x17   :  { %30 = vadd.xlane.f32.xlu0 %v29_v5 }
  0x18   :  { %p128_p11 = por %p127_p10, %p126_p9 }
  0x1a   :  { %p129_p12 = pnand %p128_p11, %p122_p8 }
  0x1b   :  { %38 = vadd.xlane.f32.xlu0 %v37_v6 }
  0xa4   :  { %v31_v7 = vpop.xlane.xlu0 %30 }
  0xa5   :  { %vm32_vm4 = vcmp.gt.f32.partialorder %v31_v7, 0.0 }
  0xa6   :  { %v33_v8 = vsel %vm32_vm4, %v31_v7, 1.0 }
  0xa7   :  { %93 = vrcp.f32 %v33_v8 }
  0xa8   :  { %v39_v9 = vpop.xlane.xlu0 %38 }
  0xb1   :  { %v94_v10 = vpop.eup %93 }
  0xb2   :  { %v40_v11 = vmul.f32 %v94_v10, %v39_v9 }
  0xb4   :  { %v41_v12 = vsel %vm32_vm4, %v40_v11, 0.0 }
  0xb5   :  { %v42_v13 = vsub.f32 %v23_v0, %v41_v12  ;;  %v58_v20 = vand.u32 2147483647, %v41_v12 }
  0xb7   :  { %v43_v14 = vmul.f32 %v42_v13, %v42_v13  ;;  %v59_v25 = vadd.f32 1e-05, %v58_v20 }
  0xb9   :  { %v44_v15 = vsel %vm178_vm3, %v43_v14, 0.0 }
  0xba   :  { %v45_v16 = vsel %vm28_vm1, %v44_v15, 0.0 }
  0xbb   :  { %46 = vadd.xlane.f32.xlu1 %v45_v16 }
 0x148   :  { %v47_v17 = vpop.xlane.xlu1 %46 }
 0x149   :  { %v48_v18 = vmul.f32 %v94_v10, %v47_v17 }
 0x14b   :  { %95 = vrsqrt.f32 %v48_v18  ;;  %vm51_vm5 = vcmp.eq.f32.partialorder %v48_v18, inf  ;;  %v54_v22 = vand.u32 2147483648, %v48_v18  ;;  %vm53_vm6 = vcmp.eq.f32.partialorder %v48_v18, 0.0 }
 0x155   :  { %v96_v19 = vpop.eup %95 }
 0x156   :  { %v50_v21 = vmul.f32 %v96_v19, %v48_v18 }
 0x158   :  { %v52_v23 = vsel %vm51_vm5, %v48_v18, %v50_v21 }
 0x159   :  { %v55_v24 = vsel %vm53_vm6, %v54_v22, %v52_v23 }
 0x15a   :  { %v56_v26 = vsel %vm32_vm4, %v55_v24, 1.0 }
 0x15b   :  { %vm57_vm8 = vcmp.eq.f32.partialorder %v56_v26, 0.0 }
 0x15c   :  { %v60_v27 = vsel %vm57_vm8, %v59_v25, %v56_v26 }
 0x15d   :  { %97 = vrcp.f32 %v60_v27  ;;  %v66_v28 = vsel %vm65_vm7, %v41_v12, %v60_v27 }
 0x15e   :  { %68 = vst.msk [vmem:[%s212_s2] sm:$0xf] %vm67_vm9, %v66_v28 }
 0x167   :  { %v98_v29 = vpop.eup %97 }
 0x168   :  { %v63_v30 = vmul.f32 %v98_v29, %v42_v13 }
 0x16a   :  { %64 = vst.msk [vmem:[#allocation5] sm:$0xf] %vm28_vm1, %v63_v30 }
 0x16b   :  { %132 = shalt.err (!%p129_p12)
}
 0x16c   :  { %s133_s27 = scalar_lea.hbm %s211_s1, 64 }
 0x16d   :  { %p134_p13 = scmp.ne.s32.totalorder %s211_s1, %s133_s27  ;;  %p137_p0 = scmp.lt.u32.totalorder %s133_s27, %s211_s1 }
 0x16f   :  { %p139_p1 = pnand %p137_p0, %p134_p13 }
 0x171   :  { %142 = shalt.err (!%p139_p1)
}
 0x172   :  { %78 = dma.vmem_to_hbm [thread:$0]  %s76_s23, 64, %s211_s1, [#allocation4]  }
 0x173   :  { %145 = dma.done.wait [#allocation4], 64  }
 0x174   :  { %146 = vsyncadd [#allocation4], 4294967232 }
 0x175   :  { %86 = vsyncpa [#allocation3], 1 }
 0x176   :  { %87 = vsyncpa [#allocation4], 1 }

</bundles_post_ra>
